<compile_context>
chip_gen: v7x
topology: tpu7x:2x2x1
jax: 0.10.0
libtpu: 0.0.40
codegen_flags: <defaults>
</compile_context>

<pallas_src>
import jax
import jax.numpy as jnp
from jax import lax
from jax.experimental import pallas as pl
from jax.experimental.pallas import tpu as pltpu

EPS = 1e-5  # nn.InstanceNorm2d default eps


def _pack_deconv_weight(w):
    """Pack a ConvTranspose2d weight (Cin, Cout, 4, 4) into (4*Cout, 9*Cin).

    Row block p = 2*py + px is the output-parity plane (oy = 2y+py, ox = 2x+px);
    column block s = (dy+1)*3 + (dx+1) is the shifted input tap x[:, y+dy, x+dx].
    For stride 2 / k=4 / pad 1, parity (py, px) tap (dy, dx) uses kernel element
    (ky, kx) = (py+1-2*dy, px+1-2*dx); taps a parity does not use stay zero.
    """
    cin, cout = w.shape[0], w.shape[1]
    packed = jnp.zeros((4 * cout, 9 * cin), w.dtype)
    for py in (0, 1):
        for px in (0, 1):
            p = 2 * py + px
            for dy in ((-1, 0) if py == 0 else (0, 1)):
                for dx in ((-1, 0) if px == 0 else (0, 1)):
                    ky = py + 1 - 2 * dy
                    kx = px + 1 - 2 * dx
                    s = (dy + 1) * 3 + (dx + 1)
                    packed = packed.at[p * cout:(p + 1) * cout,
                                       s * cin:(s + 1) * cin].set(w[:, :, ky, kx].T)
    return packed


def deconv_block_forward(x, w, b, gamma, beta):
    """DeconvBlock forward: ConvTranspose2d(k=4,s=2,p=1) -> InstanceNorm2d(affine) -> ReLU.

    x     : (B, Cin, H, W) float32        (NCHW, as in PyTorch)
    w     : (Cin, Cout, 4, 4)             (PyTorch ConvTranspose2d weight layout)
    b     : (Cout,) conv bias             (cancelled exactly by InstanceNorm; unused)
    gamma : (Cout,) InstanceNorm2d weight
    beta  : (Cout,) InstanceNorm2d bias
    returns (B, Cout, 2H, 2W) float32
    """
    del b  # per-channel constant -> removed by the instance-norm mean subtraction
    B, Cin, H, W = x.shape
    Cout = w.shape[1]
    HW = H * W
    FL = (H + 2) * W + 2          # row-padded, flattened, +1 guard zero each end
    C4 = 4 * Cout

    # ---- glue (cheap, O(input) bytes): row-pad + flatten, pack weight ------
    xr = jnp.pad(x, ((0, 0), (0, 0), (1, 1), (0, 0))).reshape(B, Cin, (H + 2) * W)
    xf = jnp.pad(xr, ((0, 0), (0, 0), (1, 1)))                      # (B, Cin, FL)
    wp = _pack_deconv_weight(w).astype(jnp.bfloat16)                # (4*Cout, 9*Cin)
    g = gamma.astype(jnp.float32).reshape(Cout, 1)
    be = beta.astype(jnp.float32).reshape(Cout, 1)
    colv = jnp.arange(HW, dtype=jnp.int32) % W
    edge_mask = jnp.stack([(colv > 0), (colv < W - 1)]).astype(jnp.float32)  # (2, HW)

    def kernel(xf_ref, w_ref, mask_ref, g_ref, bt_ref, o_ref):
        # Build the 9 shifted input taps as one (9*Cin, HW) matrix; the lane
        # dim is the flattened H*W spatial grid.
        ml = mask_ref[0:1, :]      # zero where x == 0      (column shift dx = -1)
        mr = mask_ref[1:2, :]      # zero where x == W - 1  (column shift dx = +1)
        taps = []
        for dy in (-1, 0, 1):
            for dx in (-1, 0, 1):
                start = 1 + (1 + dy) * W + dx               # static offset
                t = xf_ref[0, :, pl.ds(start, HW)]          # (Cin, HW)
                if dx == -1:
                    t = t * ml
                elif dx == 1:
                    t = t * mr
                taps.append(t)
        rhs = jnp.concatenate(taps, axis=0).astype(jnp.bfloat16)    # (9*Cin, HW)

        # One MXU matmul produces all four output-parity planes at once:
        # rows [p*Cout:(p+1)*Cout] of y are out[:, 2y+py, 2x+px] flattened.
        y = jnp.dot(w_ref[...], rhs, preferred_element_type=jnp.float32)  # (4*Cout, HW)

        # InstanceNorm2d statistics per channel over all 4*HW output pixels (f32).
        ysum = y[0:Cout] + y[Cout:2 * Cout] + y[2 * Cout:3 * Cout] + y[3 * Cout:4 * Cout]
        inv_n = 1.0 / (4.0 * HW)
        mean = jnp.sum(ysum, axis=1, keepdims=True) * inv_n         # (Cout, 1)
        mean4 = jnp.concatenate([mean] * 4, axis=0)                 # (4*Cout, 1)
        cen = y - mean4
        sq = cen * cen
        sqsum = sq[0:Cout] + sq[Cout:2 * Cout] + sq[2 * Cout:3 * Cout] + sq[3 * Cout:4 * Cout]
        var = jnp.sum(sqsum, axis=1, keepdims=True) * inv_n         # biased variance
        scale = lax.rsqrt(var + EPS) * g_ref[...]                   # (Cout, 1)
        scale4 = jnp.concatenate([scale] * 4, axis=0)
        beta4 = jnp.concatenate([bt_ref[...]] * 4, axis=0)
        # lane-dense (32, 256) store, single fused multiply-add + ReLU
        o_ref[0] = jnp.maximum(cen * scale4 + beta4, 0.0).astype(o_ref.dtype)

    out = pl.pallas_call(
        kernel,
        out_shape=jax.ShapeDtypeStruct((B, C4, HW), jnp.float32),
        grid=(B,),
        in_specs=[
            pl.BlockSpec((1, Cin, FL), lambda i: (i, 0, 0)),
            pl.BlockSpec((C4, 9 * Cin), lambda i: (0, 0)),
            pl.BlockSpec((2, HW), lambda i: (0, 0)),
            pl.BlockSpec((Cout, 1), lambda i: (0, 0)),
            pl.BlockSpec((Cout, 1), lambda i: (0, 0)),
        ],
        out_specs=pl.BlockSpec((1, C4, HW), lambda i: (i, 0, 0)),
        compiler_params=pltpu.CompilerParams(
            dimension_semantics=("parallel",)),
    )(xf, wp, edge_mask, g, be)

    # Depth-to-space: rows (py, px, co) x lanes (y, x) -> (B, Cout, 2H, 2W).
    out = out.reshape(B, 2, 2, Cout, H, W)
    out = out.transpose(0, 3, 4, 1, 5, 2).reshape(B, Cout, 2 * H, 2 * W)
    return out


# ----------------------------------------------------------------------------
# Pure-JAX/XLA reference (f32, HIGHEST precision) for a correctness check.
# ----------------------------------------------------------------------------
def deconv_block_reference(x, w, b, gamma, beta):
    y = lax.conv_general_dilated(
        x, jnp.flip(w, (2, 3)),
        window_strides=(1, 1),
        padding=((2, 2), (2, 2)),
        lhs_dilation=(2, 2),
        dimension_numbers=('NCHW', 'IOHW', 'NCHW'),
        precision=lax.Precision.HIGHEST)
    y = y + b[None, :, None, None]
    mean = y.mean(axis=(2, 3), keepdims=True)
    var = ((y - mean) ** 2).mean(axis=(2, 3), keepdims=True)
    y = (y - mean) * lax.rsqrt(var + EPS) * gamma[None, :, None, None] \
        + beta[None, :, None, None]
    return jnp.maximum(y, 0.0)


# ----------------------------------------------------------------------------
if __name__ == "__main__":
    # DeconvBlock(in_dim=4, out_dim=8, k=4, s=2, p=1, norm=True, non_linear='relu')
    B, Cin, Cout, H, W = 2, 4, 8, 16, 16

    key = jax.random.PRNGKey(0)
    ks = jax.random.split(key, 5)
    x = jax.random.normal(ks[0], (B, Cin, H, W), jnp.float32)
    w = 0.1 * jax.random.normal(ks[1], (Cin, Cout, 4, 4), jnp.float32)
    b = 0.05 * jax.random.normal(ks[2], (Cout,), jnp.float32)
    gamma = 1.0 + 0.1 * jax.random.normal(ks[3], (Cout,), jnp.float32)
    beta = 0.1 * jax.random.normal(ks[4], (Cout,), jnp.float32)

    out = jax.jit(deconv_block_forward)(x, w, b, gamma, beta)
    jax.block_until_ready(out)

    ref = deconv_block_reference(x, w, b, gamma, beta)
    assert out.shape == (B, Cout, 2 * H, 2 * W), out.shape
    max_err = float(jnp.abs(out - ref).max())
    # bf16 MXU operands with f32 accumulation / statistics
    assert jnp.allclose(out, ref, atol=2e-2, rtol=2e-2), max_err

    print("KERNEL_OK")
</pallas_src>

<mosaic_0001>
module attributes {stable_mosaic.version = 11 : i64} {
  func.func @kernel(%arg0: i32, %arg1: memref<1x4x290xf32, #tpu.memory_space<vmem>>, %arg2: memref<32x36xbf16, #tpu.memory_space<vmem>>, %arg3: memref<2x256xf32, #tpu.memory_space<vmem>>, %arg4: memref<8x1xf32, #tpu.memory_space<vmem>>, %arg5: memref<8x1xf32, #tpu.memory_space<vmem>>, %arg6: memref<1x32x256xf32, #tpu.memory_space<vmem>>) attributes {dimension_semantics = [#tpu.dimension_semantics<parallel>], iteration_bounds = array<i64: 2>, scalar_prefetch = 0 : i64, scratch_operands = 0 : i64, tpu.core_type = #tpu.core_type<tc>, window_params = [{transform_indices = @transform_0, window_bounds = array<i64: 1, 4, 290>}, {pipeline_mode = #tpu.pipeline_mode<synchronous>, transform_indices = @transform_1, window_bounds = array<i64: 32, 36>}, {pipeline_mode = #tpu.pipeline_mode<synchronous>, transform_indices = @transform_2, window_bounds = array<i64: 2, 256>}, {pipeline_mode = #tpu.pipeline_mode<synchronous>, transform_indices = @transform_3, window_bounds = array<i64: 8, 1>}, {pipeline_mode = #tpu.pipeline_mode<synchronous>, transform_indices = @transform_4, window_bounds = array<i64: 8, 1>}, {transform_indices = @transform_5, window_bounds = array<i64: 1, 32, 256>}]} {
    %c0 = arith.constant 0 : index
    %c0_0 = arith.constant 0 : index
    %0 = vector.load %arg3[%c0, %c0_0] : memref<2x256xf32, #tpu.memory_space<vmem>>, vector<1x256xf32>
    %c1 = arith.constant 1 : index
    %c0_1 = arith.constant 0 : index
    %1 = vector.load %arg3[%c1, %c0_1] : memref<2x256xf32, #tpu.memory_space<vmem>>, vector<1x256xf32>
    %c0_2 = arith.constant 0 : index
    %c0_3 = arith.constant 0 : index
    %c0_4 = arith.constant 0 : index
    %2 = vector.load %arg1[%c0_2, %c0_3, %c0_4] : memref<1x4x290xf32, #tpu.memory_space<vmem>>, vector<1x4x256xf32>
    %3 = vector.shape_cast %2 : vector<1x4x256xf32> to vector<4x256xf32>
    %4 = vector.broadcast %0 : vector<1x256xf32> to vector<4x256xf32>
    %5 = arith.mulf %3, %4 : vector<4x256xf32>
    %c0_5 = arith.constant 0 : index
    %c0_6 = arith.constant 0 : index
    %c1_7 = arith.constant 1 : index
    %6 = vector.load %arg1[%c0_5, %c0_6, %c1_7] : memref<1x4x290xf32, #tpu.memory_space<vmem>>, vector<1x4x256xf32>
    %7 = vector.shape_cast %6 : vector<1x4x256xf32> to vector<4x256xf32>
    %c0_8 = arith.constant 0 : index
    %c0_9 = arith.constant 0 : index
    %c2 = arith.constant 2 : index
    %8 = vector.load %arg1[%c0_8, %c0_9, %c2] : memref<1x4x290xf32, #tpu.memory_space<vmem>>, vector<1x4x256xf32>
    %9 = vector.shape_cast %8 : vector<1x4x256xf32> to vector<4x256xf32>
    %10 = vector.broadcast %1 : vector<1x256xf32> to vector<4x256xf32>
    %11 = arith.mulf %9, %10 : vector<4x256xf32>
    %c0_10 = arith.constant 0 : index
    %c0_11 = arith.constant 0 : index
    %c16 = arith.constant 16 : index
    %12 = vector.load %arg1[%c0_10, %c0_11, %c16] : memref<1x4x290xf32, #tpu.memory_space<vmem>>, vector<1x4x256xf32>
    %13 = vector.shape_cast %12 : vector<1x4x256xf32> to vector<4x256xf32>
    %14 = vector.broadcast %0 : vector<1x256xf32> to vector<4x256xf32>
    %15 = arith.mulf %13, %14 : vector<4x256xf32>
    %c0_12 = arith.constant 0 : index
    %c0_13 = arith.constant 0 : index
    %c17 = arith.constant 17 : index
    %16 = vector.load %arg1[%c0_12, %c0_13, %c17] : memref<1x4x290xf32, #tpu.memory_space<vmem>>, vector<1x4x256xf32>
    %17 = vector.shape_cast %16 : vector<1x4x256xf32> to vector<4x256xf32>
    %c0_14 = arith.constant 0 : index
    %c0_15 = arith.constant 0 : index
    %c18 = arith.constant 18 : index
    %18 = vector.load %arg1[%c0_14, %c0_15, %c18] : memref<1x4x290xf32, #tpu.memory_space<vmem>>, vector<1x4x256xf32>
    %19 = vector.shape_cast %18 : vector<1x4x256xf32> to vector<4x256xf32>
    %20 = vector.broadcast %1 : vector<1x256xf32> to vector<4x256xf32>
    %21 = arith.mulf %19, %20 : vector<4x256xf32>
    %c0_16 = arith.constant 0 : index
    %c0_17 = arith.constant 0 : index
    %c32 = arith.constant 32 : index
    %22 = vector.load %arg1[%c0_16, %c0_17, %c32] : memref<1x4x290xf32, #tpu.memory_space<vmem>>, vector<1x4x256xf32>
    %23 = vector.shape_cast %22 : vector<1x4x256xf32> to vector<4x256xf32>
    %24 = vector.broadcast %0 : vector<1x256xf32> to vector<4x256xf32>
    %25 = arith.mulf %23, %24 : vector<4x256xf32>
    %c0_18 = arith.constant 0 : index
    %c0_19 = arith.constant 0 : index
    %c33 = arith.constant 33 : index
    %26 = vector.load %arg1[%c0_18, %c0_19, %c33] : memref<1x4x290xf32, #tpu.memory_space<vmem>>, vector<1x4x256xf32>
    %27 = vector.shape_cast %26 : vector<1x4x256xf32> to vector<4x256xf32>
    %c0_20 = arith.constant 0 : index
    %c0_21 = arith.constant 0 : index
    %c34 = arith.constant 34 : index
    %28 = vector.load %arg1[%c0_20, %c0_21, %c34] : memref<1x4x290xf32, #tpu.memory_space<vmem>>, vector<1x4x256xf32>
    %29 = vector.shape_cast %28 : vector<1x4x256xf32> to vector<4x256xf32>
    %30 = vector.broadcast %1 : vector<1x256xf32> to vector<4x256xf32>
    %31 = arith.mulf %29, %30 : vector<4x256xf32>
    %32 = tpu.concatenate %5, %7, %11, %15, %17, %21, %25, %27, %31 in 0 : vector<4x256xf32>, vector<4x256xf32>, vector<4x256xf32>, vector<4x256xf32>, vector<4x256xf32>, vector<4x256xf32>, vector<4x256xf32>, vector<4x256xf32>, vector<4x256xf32> -> vector<36x256xf32>
    %33 = arith.truncf %32 : vector<36x256xf32> to vector<36x256xbf16>
    %c0_22 = arith.constant 0 : index
    %c0_23 = arith.constant 0 : index
    %34 = vector.load %arg2[%c0_22, %c0_23] : memref<32x36xbf16, #tpu.memory_space<vmem>>, vector<32x36xbf16>
    %cst = arith.constant dense<0.000000e+00> : vector<32x256xf32>
    %35 = tpu.matmul %34, %33, %cst {dimension_numbers = #tpu.dot_dimension_numbers<[1], [0], [0], [1], [0, 0, 1, 1], [], []>} : vector<32x36xbf16>, vector<36x256xbf16>, vector<32x256xf32> -> vector<32x256xf32>
    %36 = vector.extract_strided_slice %35 {offsets = [0, 0], sizes = [8, 256], strides = [1, 1]} : vector<32x256xf32> to vector<8x256xf32>
    %37 = vector.extract_strided_slice %35 {offsets = [8, 0], sizes = [8, 256], strides = [1, 1]} : vector<32x256xf32> to vector<8x256xf32>
    %38 = arith.addf %36, %37 : vector<8x256xf32>
    %39 = vector.extract_strided_slice %35 {offsets = [16, 0], sizes = [8, 256], strides = [1, 1]} : vector<32x256xf32> to vector<8x256xf32>
    %40 = arith.addf %38, %39 : vector<8x256xf32>
    %41 = vector.extract_strided_slice %35 {offsets = [24, 0], sizes = [8, 256], strides = [1, 1]} : vector<32x256xf32> to vector<8x256xf32>
    %42 = arith.addf %40, %41 : vector<8x256xf32>
    %cst_24 = arith.constant dense<0.000000e+00> : vector<8xf32>
    %43 = vector.multi_reduction <add>, %42, %cst_24 [1] : vector<8x256xf32> to vector<8xf32>
    %44 = vector.shape_cast %43 : vector<8xf32> to vector<8x1xf32>
    %cst_25 = arith.constant 9.765625E-4 : f32
    %45 = vector.broadcast %cst_25 : f32 to vector<8x1xf32>
    %46 = arith.mulf %44, %45 : vector<8x1xf32>
    %47 = tpu.concatenate %46, %46, %46, %46 in 0 : vector<8x1xf32>, vector<8x1xf32>, vector<8x1xf32>, vector<8x1xf32> -> vector<32x1xf32>
    %48 = vector.broadcast %47 : vector<32x1xf32> to vector<32x256xf32>
    %49 = arith.subf %35, %48 : vector<32x256xf32>
    %50 = arith.mulf %49, %49 : vector<32x256xf32>
    %51 = vector.extract_strided_slice %50 {offsets = [0, 0], sizes = [8, 256], strides = [1, 1]} : vector<32x256xf32> to vector<8x256xf32>
    %52 = vector.extract_strided_slice %50 {offsets = [8, 0], sizes = [8, 256], strides = [1, 1]} : vector<32x256xf32> to vector<8x256xf32>
    %53 = arith.addf %51, %52 : vector<8x256xf32>
    %54 = vector.extract_strided_slice %50 {offsets = [16, 0], sizes = [8, 256], strides = [1, 1]} : vector<32x256xf32> to vector<8x256xf32>
    %55 = arith.addf %53, %54 : vector<8x256xf32>
    %56 = vector.extract_strided_slice %50 {offsets = [24, 0], sizes = [8, 256], strides = [1, 1]} : vector<32x256xf32> to vector<8x256xf32>
    %57 = arith.addf %55, %56 : vector<8x256xf32>
    %cst_26 = arith.constant dense<0.000000e+00> : vector<8xf32>
    %58 = vector.multi_reduction <add>, %57, %cst_26 [1] : vector<8x256xf32> to vector<8xf32>
    %59 = vector.shape_cast %58 : vector<8xf32> to vector<8x1xf32>
    %cst_27 = arith.constant 9.765625E-4 : f32
    %60 = vector.broadcast %cst_27 : f32 to vector<8x1xf32>
    %61 = arith.mulf %59, %60 : vector<8x1xf32>
    %cst_28 = arith.constant 9.99999974E-6 : f32
    %62 = vector.broadcast %cst_28 : f32 to vector<8x1xf32>
    %63 = arith.addf %61, %62 : vector<8x1xf32>
    %64 = math.rsqrt %63 : vector<8x1xf32>
    %c0_29 = arith.constant 0 : index
    %c0_30 = arith.constant 0 : index
    %65 = vector.load %arg4[%c0_29, %c0_30] : memref<8x1xf32, #tpu.memory_space<vmem>>, vector<8x1xf32>
    %66 = arith.mulf %64, %65 : vector<8x1xf32>
    %67 = tpu.concatenate %66, %66, %66, %66 in 0 : vector<8x1xf32>, vector<8x1xf32>, vector<8x1xf32>, vector<8x1xf32> -> vector<32x1xf32>
    %c0_31 = arith.constant 0 : index
    %c0_32 = arith.constant 0 : index
    %68 = vector.load %arg5[%c0_31, %c0_32] : memref<8x1xf32, #tpu.memory_space<vmem>>, vector<8x1xf32>
    %69 = tpu.concatenate %68, %68, %68, %68 in 0 : vector<8x1xf32>, vector<8x1xf32>, vector<8x1xf32>, vector<8x1xf32> -> vector<32x1xf32>
    %70 = vector.broadcast %67 : vector<32x1xf32> to vector<32x256xf32>
    %71 = arith.mulf %49, %70 : vector<32x256xf32>
    %72 = vector.broadcast %69 : vector<32x1xf32> to vector<32x256xf32>
    %73 = arith.addf %71, %72 : vector<32x256xf32>
    %cst_33 = arith.constant 0.000000e+00 : f32
    %74 = vector.broadcast %cst_33 : f32 to vector<32x256xf32>
    %75 = arith.maximumf %73, %74 : vector<32x256xf32>
    %c0_34 = arith.constant 0 : index
    %c0_35 = arith.constant 0 : index
    %c0_36 = arith.constant 0 : index
    %76 = vector.load %arg6[%c0_34, %c0_35, %c0_36] : memref<1x32x256xf32, #tpu.memory_space<vmem>>, vector<1x32x256xf32>
    %77 = vector.shape_cast %76 : vector<1x32x256xf32> to vector<32x256xf32>
    %78 = vector.shape_cast %75 : vector<32x256xf32> to vector<1x32x256xf32>
    tpu.vector_store %arg6[%c0_34, %c0_35, %c0_36], %78 {strides = array<i32>} : memref<1x32x256xf32, #tpu.memory_space<vmem>>, vector<1x32x256xf32>,
    return
  }
  func.func @transform_0(%arg0: i32) -> (i32, i32, i32) {
    %c0_i32 = arith.constant 0 : i32
    %c0_i32_0 = arith.constant 0 : i32
    %c0_i32_1 = arith.constant 0 : i32
    return %arg0, %c0_i32, %c0_i32_0 : i32, i32, i32
  }
  func.func @transform_1(%arg0: i32) -> (i32, i32) {
    %c0_i32 = arith.constant 0 : i32
    %c0_i32_0 = arith.constant 0 : i32
    %c0_i32_1 = arith.constant 0 : i32
    return %c0_i32, %c0_i32_0 : i32, i32
  }
  func.func @transform_2(%arg0: i32) -> (i32, i32) {
    %c0_i32 = arith.constant 0 : i32
    %c0_i32_0 = arith.constant 0 : i32
    %c0_i32_1 = arith.constant 0 : i32
    return %c0_i32, %c0_i32_0 : i32, i32
  }
  func.func @transform_3(%arg0: i32) -> (i32, i32) {
    %c0_i32 = arith.constant 0 : i32
    %c0_i32_0 = arith.constant 0 : i32
    %c0_i32_1 = arith.constant 0 : i32
    return %c0_i32, %c0_i32_0 : i32, i32
  }
  func.func @transform_4(%arg0: i32) -> (i32, i32) {
    %c0_i32 = arith.constant 0 : i32
    %c0_i32_0 = arith.constant 0 : i32
    %c0_i32_1 = arith.constant 0 : i32
    return %c0_i32, %c0_i32_0 : i32, i32
  }
  func.func @transform_5(%arg0: i32) -> (i32, i32, i32) {
    %c0_i32 = arith.constant 0 : i32
    %c0_i32_0 = arith.constant 0 : i32
    %c0_i32_1 = arith.constant 0 : i32
    return %arg0, %c0_i32, %c0_i32_0 : i32, i32, i32
  }
}

</mosaic_0001>

<bundles_post_ra>
// kernel: deconv_block_forward.1
= control target key start
LH: loop header
LB: loop body
LE: loop exit
PB: predicated region body
PF: predicated region fallthrough
CT: control target
= control target key end

     0   :  { %s797_s18 = smov 0   ;;  %s902_s0 = inlined_call_operand.vmem [shape: f32[2,4,290], index: 0, kind: input, shape index: {}]   ;;  %s903_s1 = inlined_call_operand.vmem [shape: bf16[32,36], index: 1, kind: input, shape index: {}]   ;;  %s904_s2 = inlined_call_operand.vmem [shape: f32[2,256], index: 2, kind: input, shape index: {}]   ;;  %s905_s3 = inlined_call_operand.vmem [shape: f32[8,1], index: 3, kind: input, shape index: {}]   ;;  %s906_s4 = inlined_call_operand.vmem [shape: f32[8,1], index: 4, kind: input, shape index: {}]   ;;  %s907_s5 = inlined_call_operand.vmem [shape: f32[2,32,256], index: 5, kind: output, shape index: {}]  }
   0x1 LB: > { %s650_s19 = sadd.s32 4294967295, %s751_s18   ;;  %p654_p0 = scmp.ge.s32.totalorder %s751_s18, 1  ;;  %s751_s18 = sphi %s797_s18, %s15_s18  }
   0x2   : > { %p187_p1 = scmp.lt.s32.totalorder %s751_s18, 3 }
   0x4   : > { %p188_p2 = pnand %p654_p0, %p187_p1 }
   0x5   : > { %v231_v0 = vlaneseq (!%p188_p2)  ;;  %v658_v1 = vld [vmem:[%s904_s2 + $0x1] ss:$2 sm:$0x3] (!%p188_p2)  ;;  %p215_p3 = scmp.lt.s32.totalorder (!%p188_p2), %s650_s19, 1  ;;  %s753_s28 = smov (!%p188_p2), 2   ;;  %vm256_vm0 = vcmask (!%p188_p2), 15360  }
   0x6   : > { %191 = sbr.rel (%p188_p2) target bundleno = 1088 (0x440), region = 40  ;;  %v226_v3 = vld [vmem:[%s904_s2] ss:$2 sm:$0x3] (!%p188_p2)  ;;  %s754_s29 = smov (!%p188_p2), 32   ;;  %vm283_vm1 = vcmask (!%p188_p2), 261120  }
   0x7   : > { %v232_v2 = vshrl.u32 (!%p188_p2), %v231_v0, 7  ;;  %s755_s30 = smov (!%p188_p2), 18   ;;  %s756_s6 = smov (!%p188_p2), 16   ;;  %vm274_vm2 = vcmask (!%p188_p2), 146432   ;;  %vm265_vm3 = vcmask (!%p188_p2), 130048   ;;  %vm292_vm4 = vcmask (!%p188_p2), 277504  }
   0x8   : > { %s757_s7 = smov (!%p188_p2), 34   ;;  %s758_s8 = smov (!%p188_p2), 127   ;;  %v766_v54 = vmov (!%p188_p2), 0   ;;  %vm311_vm5 = vcmask (!%p188_p2), 1039360   ;;  %vm340_vm6 = vcmask (!%p188_p2), 916480   ;;  %vm367_vm7 = vcmask (!%p188_p2), 900096  }
   0x9   : > { %v233_v4 = vsub.s32 (!%p188_p2), 0, %v232_v2  ;;  %v237_v5 = vsub.s32 (!%p188_p2), 1, %v232_v2  ;;  %s759_s9 = smov (!%p188_p2), 111   ;;  %s760_s10 = smov (!%p188_p2), 95   ;;  %486 = vmatprep.mubr.bf16.mxu0 (!%p188_p2), %v766_v54  ;;  %496 = vmatprep.mubr.bf16.mxu1 (!%p188_p2), %v766_v54  ;;  %vm411_vm8 = vcmask (!%p188_p2), 1043456   ;;  %vm392_vm9 = vcmask (!%p188_p2), 777216  }
   0xa   : > { %s761_s11 = smov (!%p188_p2), 126   ;;  %s762_s12 = smov (!%p188_p2), 110   ;;  %736 = vset.pattern.permute.xlu0 (!%p188_p2), %v766_v54  ;;  %737 = vset.pattern.permute.xlu1 (!%p188_p2), %v766_v54  ;;  %vm381_vm10 = vcmask (!%p188_p2), 785408   ;;  %vm325_vm11 = vcmask (!%p188_p2), 1031168   ;;  %vm352_vm12 = vcmask (!%p188_p2), 908288   ;;  %vm406_vm13 = vcmask (!%p188_p2), 769024  }
   0xb   : > { %v247_v6 = vrot.slane (!%p188_p2), %v658_v1, %v233_v4  ;;  %v251_v7 = vrot.slane (!%p188_p2), %v658_v1, %v237_v5  ;;  %v234_v8 = vrot.slane (!%p188_p2), %v226_v3, %v233_v4  ;;  %v238_v9 = vrot.slane (!%p188_p2), %v226_v3, %v237_v5  ;;  %s763_s13 = smov (!%p188_p2), 112   ;;  %s764_s14 = smov (!%p188_p2), 96  }
   0xc   : > { %s765_s15 = smov (!%p188_p2), 94   ;;  %vm447_vm14 = vcmask (!%p188_p2), 1041408   ;;  %vm440_vm15 = vcmask (!%p188_p2), 293888  }
   0xd   : > { %s909_s19 = smov (!%p215_p3, %s650_s19), 1  ;;  %v252_v10 = vcombine.low %v247_v6, %v251_v7  ;;  %v817_v11 = vcombine.low %v234_v8, %v238_v9 }
   0xe   : > { %s673_s24 = smul.u32 12, %s909_s19  ;;  %s666_s26 = sshll.u32 %s909_s19, 6 }
   0xf   : > { %253 = vrot.lane.b32.xlu0 %v252_v10, %s753_s28  ;;  %280 = vrot.lane.b32.xlu1 %v817_v11, %s754_s29  ;;  %s224_s29 = scalar_lea.vmem %s907_s5, %s666_s26 }
  0x10   : > { %s219_s27 = scalar_lea.vmem %s902_s0, %s673_s24 }
  0x11   : > { %v819_v12 = vld [vmem:[%s219_s27 + $0x8] sm:$0xf]  ;;  %v824_v14 = vld [vmem:[%s219_s27] sm:$0xff] }
  0x12   : > { %v304_v13 = vcombine.low %v819_v12, %v819_v12  ;;  %v345_v16 = vcombine.high %v824_v14, %v824_v14  ;;  %v303_v18 = vcombine.low %v824_v14, %v824_v14  ;;  %v241_v63 = vmul.f32 %v817_v11, %v824_v14 }
  0x13   : > { %271 = vrot.lane.b32.xlu1 %v252_v10, %s755_s30  ;;  %262 = vrot.lane.b32.xlu0 %v817_v11, %s756_s6 }
  0x14   : > { %v696_v15 = vpack.i.bf16 %v304_v13, %v824_v14  ;;  %v701_v17 = vpack.i.bf16 %v819_v12, %v345_v16  ;;  %v299_v6 = vcombine.high %v241_v63, %v241_v63 }
  0x17   : > { %289 = vrot.lane.b32.xlu0 %v252_v10, %s757_s7  ;;  %697 = vrot.lane.b32.xlu1 %v696_v15, %s758_s8 }
  0x1b   : > { %702 = vrot.lane.b32.xlu1 %v701_v17, %s759_s9  ;;  %305 = vrot.lane.b32.xlu0 %v303_v18, %s758_s8 }
  0x1f   : > { %346 = vrot.lane.b32.xlu1 %v824_v14, %s759_s9  ;;  %707 = vrot.lane.b32.xlu0 %v696_v15, %s760_s10 }
  0x81   : > { %v254_v19 = vpop.permute.xlu0 %253  ;;  %v281_v20 = vpop.permute.xlu1 %280 }
  0x82   : > { %v255_v21 = vrot.slane %v254_v19, 4  ;;  %v282_v22 = vrot.slane %v281_v20, 4 }
  0x84   : > { %v257_v23 = vsel %vm256_vm0, %v255_v21, %v254_v19  ;;  %v284_v24 = vsel %vm283_vm1, %v282_v22, %v281_v20  ;;  %v261_v41 = vmul.f32 %v255_v21, %v819_v12  ;;  %v288_v47 = vmul.f32 %v282_v22, %v819_v12 }
  0x85   : > { %v260_v25 = vmul.f32 %v257_v23, %v824_v14  ;;  %v272_v26 = vpop.permute.xlu1 %271  ;;  %v263_v27 = vpop.permute.xlu0 %262  ;;  %v287_v30 = vmul.f32 %v284_v24, %v824_v14 }
  0x86   : > { %v273_v28 = vrot.slane %v272_v26, 4  ;;  %v264_v29 = vrot.slane %v263_v27, 4 }
  0x87   : > { %319 = vrot.lane.b32.xlu1 %v260_v25, %s761_s11  ;;  %v318_v42 = vcombine.high %v260_v25, %v260_v25  ;;  %v374_v43 = vcombine.high %v287_v30, %v287_v30 }
  0x88   : > { %v275_v31 = vsel %vm274_vm2, %v273_v28, %v272_v26  ;;  %v279_v32 = vmul.f32 %v273_v28, %v819_v12  ;;  %v266_v33 = vsel %vm265_vm3, %v264_v29, %v263_v27  ;;  %v270_v34 = vmul.f32 %v264_v29, %v819_v12 }
  0x89   : > { %v278_v35 = vmul.f32 %v275_v31, %v824_v14  ;;  %v269_v36 = vmul.f32 %v266_v33, %v824_v14  ;;  %v290_v37 = vpop.permute.xlu0 %289  ;;  %v726_v49 = vpack.i.bf16 %v288_v47, %v374_v43  ;;  %v721_v50 = vpack.i.bf16 %v261_v41, %v318_v42  ;;  %v698_v57 = vpop.permute.xlu1 %697 }
  0x8a   : > { %v360_v38 = vcombine.low %v279_v32, %v279_v32  ;;  %v333_v39 = vcombine.low %v270_v34, %v270_v34  ;;  %v291_v40 = vrot.slane %v290_v37, 4  ;;  %v700_v0 = vunpack.i.h.bf16 %v698_v57 }
  0x8b   : > { %v332_v52 = vcombine.low %v269_v36, %v269_v36  ;;  %v359_v55 = vcombine.low %v278_v35, %v278_v35  ;;  %v699_v1 = vunpack.i.l.bf16 %v698_v57 }
  0x8c   : > { %v716_v44 = vpack.i.bf16 %v360_v38, %v278_v35  ;;  %v711_v45 = vpack.i.bf16 %v333_v39, %v269_v36  ;;  %v293_v46 = vsel %vm292_vm4, %v291_v40, %v290_v37  ;;  %v297_v56 = vmul.f32 %v291_v40, %v819_v12 }
  0x8d   : > { %v296_v48 = vmul.f32 %v293_v46, %v824_v14  ;;  %v848_v58 = vpop.permute.xlu1 %702  ;;  %v306_v60 = vpop.permute.xlu0 %305  ;;  %v313_v8 = vsel %vm311_vm5, %v699_v1, %v700_v0 }
  0x8e   : > { %717 = vrot.lane.b32.xlu0 %v716_v44, %s762_s12  ;;  %712 = vrot.lane.b32.xlu1 %v711_v45, %s763_s13  ;;  %v705_v19 = vunpack.i.h.bf16 %v848_v58  ;;  %v704_v20 = vunpack.i.l.bf16 %v848_v58  ;;  %v312_v21 = vsel %vm311_vm5, %v306_v60, %v699_v1  ;;  %v413_v27 = vsel %vm411_vm8, %v299_v6, %v313_v8  ;;  %v741_v58 = vld [vmem:[%s903_s1] sm:$0xff]  }
  0x8f   : > { %v399_v51 = vcombine.high %v296_v48, %v296_v48  ;;  %v412_v35 = vsel %vm411_vm8, %v241_v63, %v312_v21 }
  0x90   : > { %v354_v34 = vsel %vm352_vm12, %v704_v20, %v705_v19 }
  0x91   : > { %v731_v53 = vpack.i.bf16 %v399_v51, %v296_v48  ;;  %v850_v59 = vpop.permute.xlu1 %346  ;;  %v852_v61 = vpop.permute.xlu0 %707 }
  0x92   : > { %727 = vrot.lane.b32.xlu1 %v726_v49, %s764_s14  ;;  %722 = vrot.lane.b32.xlu0 %v721_v50, %s761_s11  ;;  %v710_v7 = vunpack.i.h.bf16 %v852_v61  ;;  %v709_v9 = vunpack.i.l.bf16 %v852_v61  ;;  %v353_v46 = vsel %vm352_vm12, %v850_v59, %v704_v20  ;;  %v742_v59 = vld [vmem:[%s903_s1 + $0x8] sm:$0xff]  }
  0x94   : > { %v394_v29 = vsel %vm392_vm9, %v709_v9, %v710_v7 }
  0x96   : > { %375 = vrot.lane.b32.xlu1 %v287_v30, %s764_s14  ;;  %334 = vrot.lane.b32.xlu0 %v332_v52, %s763_s13 }
  0x9a   : > { %386 = vrot.lane.b32.xlu0 %v303_v18, %s760_s10  ;;  %732 = vrot.lane.b32.xlu1 %v731_v53, %s765_s15 }
  0x9e   : > { %361 = vrot.lane.b32.xlu0 %v359_v55, %s762_s12 }
  0xa2   : > { %404 = vrot.lane.b32.xlu0 %v297_v56, %s765_s15 }
  0xf9   : > { %v320_v62 = vpop.permute.xlu1 %319 }
 0x100   : > { %v718_v2 = vpop.permute.xlu0 %717  ;;  %v713_v3 = vpop.permute.xlu1 %712 }
 0x101   : > { %v715_v4 = vunpack.i.h.bf16 %v713_v3  ;;  %v714_v5 = vunpack.i.l.bf16 %v713_v3  ;;  %v720_v10 = vunpack.i.h.bf16 %v718_v2  ;;  %v719_v11 = vunpack.i.l.bf16 %v718_v2 }
 0x103   : > { %v342_v14 = vsel %vm340_vm6, %v714_v5, %v715_v4  ;;  %v369_v24 = vsel %vm367_vm7, %v719_v11, %v720_v10 }
 0x104   : > { %v728_v12 = vpop.permute.xlu1 %727  ;;  %v723_v13 = vpop.permute.xlu0 %722  ;;  %v417_v38 = vsel %vm411_vm8, %v354_v34, %v369_v24 }
 0x105   : > { %v730_v15 = vunpack.i.h.bf16 %v728_v12  ;;  %v729_v16 = vunpack.i.l.bf16 %v728_v12  ;;  %v725_v17 = vunpack.i.h.bf16 %v723_v13  ;;  %v724_v18 = vunpack.i.l.bf16 %v723_v13 }
 0x107   : > { %v383_v22 = vsel %vm381_vm10, %v729_v16, %v730_v15  ;;  %v327_v23 = vsel %vm325_vm11, %v724_v18, %v725_v17  ;;  %v326_v32 = vsel %vm325_vm11, %v320_v62, %v724_v18 }
 0x108   : > { %v376_v25 = vpop.permute.xlu1 %375  ;;  %v335_v26 = vpop.permute.xlu0 %334  ;;  %v415_v28 = vsel %vm411_vm8, %v327_v23, %v342_v14  ;;  %v419_v33 = vsel %vm411_vm8, %v383_v22, %v394_v29 }
 0x109   : > { %v341_v30 = vsel %vm340_vm6, %v335_v26, %v714_v5  ;;  %v421_v31 = vpack.c.bf16 %v415_v28, %v413_v27  ;;  %v423_v41 = vpack.c.bf16 %v419_v33, %v417_v38  ;;  %v382_v47 = vsel %vm381_vm10, %v376_v25, %v729_v16 }
 0x10a   : > { %v414_v36 = vsel %vm411_vm8, %v326_v32, %v341_v30 }
 0x10b   : > { %454 = vmatprep.subr.bf16.mxu0 %v421_v31  ;;  %667 = vmatprep.subr.bf16.mxu1 %v421_v31  ;;  %v420_v37 = vpack.c.bf16 %v414_v36, %v412_v35 }
 0x10c   : > { %v387_v39 = vpop.permute.xlu0 %386  ;;  %v733_v40 = vpop.permute.xlu1 %732 }
 0x10d   : > { %455 = vmatpush1.bf16.msra.mxu0 %v420_v37  ;;  %670 = vmatpush1.bf16.msra.mxu1 %v420_v37  ;;  %v735_v42 = vunpack.i.h.bf16 %v733_v40  ;;  %v734_v43 = vunpack.i.l.bf16 %v733_v40  ;;  %v393_v44 = vsel %vm392_vm9, %v387_v39, %v709_v9  ;;  %v552_v37 = vld [vmem:[%s906_s4] sm:$0xff] }
 0x10e   : > { %456 = vmatprep.subr.bf16.mxu0 %v423_v41  ;;  %668 = vmatprep.subr.bf16.mxu1 %v423_v41  ;;  %v418_v50 = vsel %vm411_vm8, %v382_v47, %v393_v44  ;;  %v550_v41 = vld [vmem:[%s905_s3] sm:$0xff] }
 0x10f   : > { %v407_v49 = vsel %vm406_vm13, %v734_v43, %v735_v42 }
 0x110   : > { %v362_v45 = vpop.permute.xlu0 %361  ;;  %v424_v54 = vpack.c.bf16 %v407_v49, %v407_v49 }
 0x111   : > { %v368_v48 = vsel %vm367_vm7, %v362_v45, %v719_v11 }
 0x112   : > { %v416_v51 = vsel %vm411_vm8, %v353_v46, %v368_v48  ;;  %v449_v57 = vsel %vm447_vm14, %v424_v54, 0 }
 0x113   : > { %v422_v52 = vpack.c.bf16 %v418_v50, %v416_v51 }
 0x114   : > { %v405_v53 = vpop.permute.xlu0 %404 }
 0x115   : > { %v408_v55 = vsel %vm406_vm13, %v735_v42, %v405_v53  ;;  %457 = vmatpush1.bf16.msra.mxu0 %v422_v52  ;;  %671 = vmatpush1.bf16.msra.mxu1 %v422_v52 }
 0x116   : > { %v425_v56 = vpack.c.bf16 %v408_v55, %v408_v55 }
 0x118   : > { %661 = vmatprep.subr.msk.bf16.mxu0 %vm447_vm14, %v425_v56  ;;  %669 = vmatprep.subr.msk.bf16.mxu1 %vm447_vm14, %v425_v56 }
 0x119   : > { %459 = vmatpush1.bf16.msra.mxu0 %v449_v57  ;;  %672 = vmatpush1.bf16.msra.mxu1 %v449_v57 }
 0x11c   : > { %662 = vmatmul.mubr.msk.bf16.vlgmr.msra.gmra.mrb[0].mxu0 %vm440_vm15, %v741_v58  ;;  %663 = vmatmul.mubr.msk.bf16.vlgmr.msra.gmra.mrb[0].mxu1 %vm440_vm15, %v742_v59 }
 0x1ef   : > { %v488_v60 = vpop.f32.mrb[0].mxu0  ;;  %v498_v61 = vpop.f32.mrb[0].mxu1 }
 0x1f0   : > { %v490_v62 = vpop.f32.mrb[1].mxu0  ;;  %v500_v63 = vpop.f32.mrb[1].mxu1 }
 0x1f1   : > { %v492_v0 = vpop.f32.mrb[2].mxu0  ;;  %v502_v1 = vpop.f32.mrb[2].mxu1 }
 0x1f2   : > { %v507_v2 = vadd.f32 %v492_v0, %v488_v60  ;;  %v494_v3 = vpop.f32.mrb[3].mxu0  ;;  %v504_v4 = vpop.f32.mrb[3].mxu1 }
 0x1f3   : > { %v508_v5 = vadd.f32 %v494_v3, %v490_v62 }
 0x1f4   : > { %v509_v6 = vadd.f32 %v507_v2, %v498_v61 }
 0x1f5   : > { %v510_v7 = vadd.f32 %v508_v5, %v500_v63 }
 0x1f6   : > { %v511_v8 = vadd.f32 %v509_v6, %v502_v1 }
 0x1f7   : > { %v512_v9 = vadd.f32 %v510_v7, %v504_v4 }
 0x1f9   : > { %v513_v10 = vadd.f32 %v512_v9, %v511_v8 }
 0x1fb   : > { %514 = vadd.xlane.f32.xlu1 %v513_v10 }
 0x288   : > { %v515_v11 = vpop.xlane.xlu1 %514 }
 0x289   : > { %v516_v12 = vmul.f32 0.0009765625, %v515_v11 }
 0x28b   : > { %519 = vperm.xlu0 %736, %v516_v12  }
 0x30a   : > { %v520_v13 = vpop.permute.xlu0 %519 }
 0x30b   : > { %v522_v14 = vsub.f32 %v488_v60, %v520_v13  ;;  %v523_v15 = vsub.f32 %v490_v62, %v520_v13  ;;  %v524_v16 = vsub.f32 %v492_v0, %v520_v13  ;;  %v525_v17 = vsub.f32 %v494_v3, %v520_v13 }
 0x30c   : > { %v526_v18 = vsub.f32 %v498_v61, %v520_v13  ;;  %v527_v19 = vsub.f32 %v500_v63, %v520_v13  ;;  %v528_v20 = vsub.f32 %v502_v1, %v520_v13  ;;  %v529_v21 = vsub.f32 %v504_v4, %v520_v13 }
 0x30d   : > { %v530_v22 = vmul.f32 %v522_v14, %v522_v14  ;;  %v531_v23 = vmul.f32 %v523_v15, %v523_v15  ;;  %v532_v24 = vmul.f32 %v524_v16, %v524_v16  ;;  %v533_v25 = vmul.f32 %v525_v17, %v525_v17 }
 0x30e   : > { %v534_v26 = vmul.f32 %v526_v18, %v526_v18  ;;  %v535_v27 = vmul.f32 %v527_v19, %v527_v19  ;;  %v536_v30 = vmul.f32 %v528_v20, %v528_v20  ;;  %v537_v31 = vmul.f32 %v529_v21, %v529_v21 }
 0x30f   : > { %v538_v28 = vadd.f32 %v532_v24, %v530_v22  ;;  %v539_v29 = vadd.f32 %v533_v25, %v531_v23 }
 0x311   : > { %v540_v32 = vadd.f32 %v538_v28, %v534_v26  ;;  %v541_v33 = vadd.f32 %v539_v29, %v535_v27 }
 0x313   : > { %v542_v34 = vadd.f32 %v540_v32, %v536_v30  ;;  %v543_v35 = vadd.f32 %v541_v33, %v537_v31 }
 0x315   : > { %v544_v36 = vadd.f32 %v543_v35, %v542_v34 }
 0x317   : > { %545 = vadd.xlane.f32.xlu0 %v544_v36 }
 0x32d   : > { %568 = vperm.xlu0 %736, %v552_v37  }
 0x3a4   : > { %v546_v38 = vpop.xlane.xlu0 %545 }
 0x3a5   : > { %v547_v39 = vmul.f32 0.0009765625, %v546_v38 }
 0x3a7   : > { %v548_v40 = vadd.f32 1e-05, %v547_v39 }
 0x3a9   : > { %743 = vrsqrt.f32 %v548_v40 }
 0x3ac   : > { %v569_v49 = vpop.permute.xlu0 %568 }
 0x3b3   : > { %v744_v42 = vpop.eup %743 }
 0x3b4   : > { %v551_v43 = vmul.f32 %v744_v42, %v550_v41 }
 0x3b6   : > { %555 = vperm.xlu1 %737, %v551_v43  }
 0x435   : > { %v556_v44 = vpop.permute.xlu1 %555 }
 0x436   : > { %v558_v45 = vmul.f32 %v556_v44, %v522_v14  ;;  %v559_v46 = vmul.f32 %v556_v44, %v523_v15  ;;  %v560_v47 = vmul.f32 %v556_v44, %v524_v16  ;;  %v561_v48 = vmul.f32 %v556_v44, %v525_v17 }
 0x437   : > { %v562_v50 = vmul.f32 %v556_v44, %v526_v18  ;;  %v563_v51 = vmul.f32 %v556_v44, %v527_v19  ;;  %v564_v52 = vmul.f32 %v556_v44, %v528_v20  ;;  %v565_v53 = vmul.f32 %v556_v44, %v529_v21 }
 0x438   : > { %v571_v54 = vadd.f32 %v569_v49, %v558_v45  ;;  %v572_v55 = vadd.f32 %v569_v49, %v559_v46  ;;  %v573_v56 = vadd.f32 %v569_v49, %v560_v47  ;;  %v574_v57 = vadd.f32 %v569_v49, %v561_v48 }
 0x439   : > { %v575_v58 = vadd.f32 %v569_v49, %v562_v50  ;;  %v576_v59 = vadd.f32 %v569_v49, %v563_v51  ;;  %v577_v60 = vadd.f32 %v569_v49, %v564_v52  ;;  %v578_v61 = vadd.f32 %v569_v49, %v565_v53 }
 0x43a   : > { %v579_v62 = vmax.f32 %v571_v54, 0.0  ;;  %v580_v63 = vmax.f32 %v572_v55, 0.0  ;;  %v581_v0 = vmax.f32 %v573_v56, 0.0  ;;  %v582_v1 = vmax.f32 %v574_v57, 0.0 }
 0x43b   : > { %v583_v2 = vmax.f32 %v575_v58, 0.0  ;;  %v584_v3 = vmax.f32 %v576_v59, 0.0  ;;  %v585_v4 = vmax.f32 %v577_v60, 0.0  ;;  %v586_v5 = vmax.f32 %v578_v61, 0.0 }
 0x43c   : > { %587 = vst [vmem:[%s224_s29] sm:$0xff] %v579_v62  ;;  %588 = vst [vmem:[%s224_s29 + $0x8] sm:$0xff] %v580_v63 }
 0x43d   : > { %589 = vst [vmem:[%s224_s29 + $0x10] sm:$0xff] %v581_v0  ;;  %590 = vst [vmem:[%s224_s29 + $0x18] sm:$0xff] %v582_v1 }
 0x43e   : > { %591 = vst [vmem:[%s224_s29 + $0x20] sm:$0xff] %v583_v2  ;;  %592 = vst [vmem:[%s224_s29 + $0x28] sm:$0xff] %v584_v3 }
 0x43f   : > { %593 = vst [vmem:[%s224_s29 + $0x30] sm:$0xff] %v585_v4  ;;  %594 = vst [vmem:[%s224_s29 + $0x38] sm:$0xff] %v586_v5 }
 0x440 PF: > { %s15_s18 = sadd.s32 1, %s751_s18  }
 0x441   : > { %p12_p4 = scmp.ge.s32.totalorder %s15_s18, 4  }
 0x443   :  { %14 = sbr.rel (!%p12_p4) target bundleno = 1 (0x1), region = 71 }

</bundles_post_ra>
